<compile_context>
chip_gen: v5e
topology: v5e:2x2
jax: 0.10.0
libtpu: 0.0.40
codegen_flags: <defaults>
</compile_context>

<pallas_src>
import jax
import jax.numpy as jnp
from jax.experimental import pallas as pl
from jax.experimental.pallas import tpu as pltpu  # noqa: F401  (TPU backend assumed)


def _dropout_identity_kernel(x_ref, o_ref):
    # Eval-mode dropout is the identity on x1.  Write both output copies
    # (x3, x4) with ONE store via a sublane broadcast: (1, N) -> (2, N).
    o_ref[...] = jnp.broadcast_to(x_ref[...], o_ref.shape)


def model_forward(x1, x2):
    # x2 has no effect on the math (dropout's `p` must be a float); keep the
    # (x1, x2) call signature but do not DMA x2 into the kernel.
    del x2
    orig_shape = x1.shape
    n = x1.size
    x_flat = x1.reshape(1, n)  # lane-dense: all elements along the last dim

    stacked = pl.pallas_call(
        _dropout_identity_kernel,
        out_shape=jax.ShapeDtypeStruct((2, n), x1.dtype),
        in_specs=[pl.BlockSpec((1, n), lambda: (0, 0))],
        out_specs=pl.BlockSpec((2, n), lambda: (0, 0)),
    )(x_flat)

    x3 = stacked[0].reshape(orig_shape)  # x3 = dropout1(x1, x2)
    x4 = stacked[1].reshape(orig_shape)  # x4 = dropout2(x1, x2)
    return x3, x4


if __name__ == "__main__":
    key = jax.random.PRNGKey(0)
    k1, k2 = jax.random.split(key)
    # Shapes consistent with the module: x1, x2 = torch.randn(1, 2, 2)
    x1 = jax.random.normal(k1, (1, 2, 2), dtype=jnp.float32)
    x2 = jax.random.normal(k2, (1, 2, 2), dtype=jnp.float32)

    x3, x4 = model_forward(x1, x2)
    jax.block_until_ready((x3, x4))

    # Sanity: eval-mode dropout is identity on x1 for both outputs.
    assert x3.shape == (1, 2, 2) and x4.shape == (1, 2, 2)
    assert jnp.allclose(x3, x1) and jnp.allclose(x4, x1)
    print("KERNEL_OK")
</pallas_src>

<mosaic_0001>
module attributes {stable_mosaic.version = 11 : i64} {
  func.func @_dropout_identity_kernel(%arg0: memref<1x4xf32, #tpu.memory_space<vmem>>, %arg1: memref<2x4xf32, #tpu.memory_space<vmem>>) attributes {dimension_semantics = [], scalar_prefetch = 0 : i64, scratch_operands = 0 : i64, tpu.core_type = #tpu.core_type<tc>} {
    %c0 = arith.constant 0 : index
    %c0_0 = arith.constant 0 : index
    %0 = vector.load %arg0[%c0, %c0_0] : memref<1x4xf32, #tpu.memory_space<vmem>>, vector<1x4xf32>
    %1 = vector.shape_cast %0 : vector<1x4xf32> to vector<1x4xf32>
    %2 = vector.broadcast %1 : vector<1x4xf32> to vector<2x4xf32>
    %c0_1 = arith.constant 0 : index
    %c0_2 = arith.constant 0 : index
    %3 = vector.load %arg1[%c0_1, %c0_2] : memref<2x4xf32, #tpu.memory_space<vmem>>, vector<2x4xf32>
    tpu.vector_store %arg1[%c0_1, %c0_2], %2 {strides = array<i32>} : memref<2x4xf32, #tpu.memory_space<vmem>>, vector<2x4xf32>,
    return
  }
}

</mosaic_0001>

<bundles_post_ra>
// kernel: tpu_custom_call.1
= control target key start
LH: loop header
LB: loop body
LE: loop exit
PB: predicated region body
PF: predicated region fallthrough
CT: control target
= control target key end

     0   :  { %6 = vsyncpa [#allocation3], 0  ;;  %s119_s0 = inlined_call_operand.hbm [shape: f32[1,4], index: 0, kind: input, shape index: {}]   ;;  %s120_s1 = inlined_call_operand.hbm [shape: f32[2,4], index: 1, kind: output, shape index: {}]  }
   0x1   :  { %7 = vsyncpa [#allocation4], 0  ;;  %s13_s8 = sshll.u32 %s119_s0, 4  ;;  %s101_s9 = smov [#allocation2]   ;;  %s14_s8 = int_to_ptr.hbm [resolvable:$true] %s13_s8 }
   0x2   :  { %s15_s10 = sshll.u32 %s101_s9, 4  ;;  %s16_s10 = int_to_ptr.vmem [resolvable:$true] %s15_s10 }
   0x3   :  { %18 = dma.hbm_to_vmem [thread:$0]  %s14_s8, 16, %s16_s10, [#allocation3]  }
   0x4   :  { %97 = dma.done.wait [#allocation3], 16  }
   0x5   :  { %98 = vsyncadd [#allocation3], 4294967280  ;;  %s102_s11 = smov [#allocation5]   ;;  %s36_s15 = sshll.u32 %s120_s1, 4  ;;  %vm27_vm0 = vcmask 25600   ;;  %s37_s15 = int_to_ptr.hbm [resolvable:$true] %s36_s15 }
   0x6   :  { %s34_s12 = sshll.u32 %s102_s11, 4  ;;  %v48_v0 = vld [vmem:[#allocation2] ss:$0 sm:$0xff]  ;;  %s35_s12 = int_to_ptr.vmem [resolvable:$true] %s34_s12 }
   0x7   :  { %28 = vst.msk [vmem:[#allocation5] sm:$0x3] %vm27_vm0, %v48_v0 }
   0x8   :  { %39 = dma.vmem_to_hbm [thread:$0]  %s35_s12, 32, %s37_s15, [#allocation4]  }
   0x9   :  { %99 = dma.done.wait [#allocation4], 32  }
   0xa   :  { %100 = vsyncadd [#allocation4], 4294967264 }
   0xb   :  { %44 = vsyncpa [#allocation3], 1 }
   0xc   :  { %45 = vsyncpa [#allocation4], 1 }

</bundles_post_ra>
